<compile_context>
chip_gen: v5e
topology: v5e:2x2
jax: 0.10.0
libtpu: 0.0.40
codegen_flags: <defaults>
</compile_context>

<pallas_src>
import math
import functools

import jax
import jax.numpy as jnp
from jax.experimental import pallas as pl
from jax.experimental.pallas import tpu as pltpu


def ffn_kernel(x_ref, g_ref, beta_ref, w1_ref, b1_ref, w2_ref, b2_ref, o_ref,
               *, eps):
    # ---- LayerNorm (f32, matches torch biased-variance + eps-inside-sqrt) --
    x = x_ref[...].astype(jnp.float32)                      # (TM, D)
    mean = jnp.mean(x, axis=-1, keepdims=True)
    xc = x - mean
    var = jnp.mean(xc * xc, axis=-1, keepdims=True)
    xn = xc * jax.lax.rsqrt(var + eps)                      # EUP rsqrt
    xn = xn * g_ref[...] + beta_ref[...]                    # affine, (1,D) broadcast

    # ---- Linear 1 + ReLU (bf16 operands, f32 accumulation) -----------------
    h = jnp.dot(xn.astype(jnp.bfloat16), w1_ref[...],
                preferred_element_type=jnp.float32) + b1_ref[...]   # (TM, d_ff)
    h = jnp.maximum(h, 0.0)
    # TODO(synk): dropout_1 (p=0.1) skipped -- eval-mode forward.

    # ---- Linear 2 -----------------------------------------------------------
    y = jnp.dot(h.astype(jnp.bfloat16), w2_ref[...],
                preferred_element_type=jnp.float32) + b2_ref[...]   # (TM, D)
    # TODO(synk): dropout_2 (p=0.1) skipped -- eval-mode forward.
    o_ref[...] = y.astype(o_ref.dtype)


def _pick_block_m(n):
    """Largest token-tile that divides n, preferring >=2 grid steps."""
    candidates = (512, 256, 128, 64, 32, 16, 8)
    for c in candidates:
        if n % c == 0 and n // c >= 2:
            return c
    for c in candidates:
        if n % c == 0:
            return c
    return n


def position_wise_feed_forward(x, params, *, eps=1e-6):
    """x: (B, S, d_model) f32.  params: dict of LN/Linear weights (torch layout)."""
    B, S, D = x.shape
    d_ff = params["w1"].shape[0]

    # Host-side prep: nn.Linear stores weight as (out, in) -> pre-transpose so
    # the kernel does x @ W with no in-kernel transpose; cast weights to bf16.
    w1 = params["w1"].T.astype(jnp.bfloat16)          # (D, d_ff)
    w2 = params["w2"].T.astype(jnp.bfloat16)          # (d_ff, D)
    b1 = params["b1"].reshape(1, d_ff).astype(jnp.float32)
    b2 = params["b2"].reshape(1, D).astype(jnp.float32)
    gamma = params["ln_g"].reshape(1, D).astype(jnp.float32)
    beta = params["ln_b"].reshape(1, D).astype(jnp.float32)

    # Flatten tokens and tile along one parallel grid axis.
    n_tok = B * S
    x2 = x.reshape(n_tok, D)
    tm = _pick_block_m(n_tok)
    n_pad = -n_tok % tm
    if n_pad:
        x2 = jnp.pad(x2, ((0, n_pad), (0, 0)))
    n_total = x2.shape[0]
    grid = (n_total // tm,)

    kernel = functools.partial(ffn_kernel, eps=eps)

    x_spec = pl.BlockSpec((tm, D), lambda i: (i, 0))
    row_d_spec = pl.BlockSpec((1, D), lambda i: (0, 0))
    row_ff_spec = pl.BlockSpec((1, d_ff), lambda i: (0, 0))
    w1_spec = pl.BlockSpec((D, d_ff), lambda i: (0, 0))
    w2_spec = pl.BlockSpec((d_ff, D), lambda i: (0, 0))

    out = pl.pallas_call(
        kernel,
        out_shape=jax.ShapeDtypeStruct((n_total, D), x.dtype),
        grid_spec=pltpu.PrefetchScalarGridSpec(
            num_scalar_prefetch=0,
            grid=grid,
            in_specs=[x_spec, row_d_spec, row_d_spec,
                      w1_spec, row_ff_spec, w2_spec, row_d_spec],
            out_specs=pl.BlockSpec((tm, D), lambda i: (i, 0)),
        ),
        compiler_params=pltpu.CompilerParams(
            dimension_semantics=("parallel",)),
    )(x2, gamma, beta, w1, b1, w2, b2)

    if n_pad:
        out = out[:n_tok]
    return out.reshape(B, S, D)


def _reference(x, params, *, eps=1e-6):
    """Pure-JAX f32 reference mirroring the PyTorch forward (eval mode)."""
    mean = jnp.mean(x, axis=-1, keepdims=True)
    var = jnp.mean((x - mean) ** 2, axis=-1, keepdims=True)
    xn = (x - mean) / jnp.sqrt(var + eps)
    xn = xn * params["ln_g"] + params["ln_b"]
    h = jnp.maximum(xn @ params["w1"].T + params["b1"], 0.0)
    return h @ params["w2"].T + params["b2"]


def init_params(key, d_model, d_ff):
    """Deterministic init matching nn.Linear / nn.LayerNorm defaults."""
    k1, k2, k3, k4 = jax.random.split(key, 4)
    b_in = 1.0 / math.sqrt(d_model)
    b_ff = 1.0 / math.sqrt(d_ff)
    return {
        "w1": jax.random.uniform(k1, (d_ff, d_model), jnp.float32, -b_in, b_in),
        "b1": jax.random.uniform(k2, (d_ff,), jnp.float32, -b_in, b_in),
        "w2": jax.random.uniform(k3, (d_model, d_ff), jnp.float32, -b_ff, b_ff),
        "b2": jax.random.uniform(k4, (d_model,), jnp.float32, -b_ff, b_ff),
        "ln_g": jnp.ones((d_model,), jnp.float32),
        "ln_b": jnp.zeros((d_model,), jnp.float32),
    }


if __name__ == "__main__":
    B, S, d_model, d_ff = 2, 8, 32, 64

    root = jax.random.PRNGKey(0)
    kx, kp = jax.random.split(root)
    x = jax.random.normal(kx, (B, S, d_model), dtype=jnp.float32)
    params = init_params(kp, d_model, d_ff)

    out = position_wise_feed_forward(x, params)
    out = jax.block_until_ready(out)

    ref = _reference(x, params)
    assert out.shape == (B, S, d_model)
    # bf16 matmul operands (f32 accumulation) -> relaxed tolerance vs f32 ref.
    max_err = float(jnp.max(jnp.abs(out - ref)))
    assert max_err < 3e-2, f"mismatch vs reference: max_err={max_err}"

    print("KERNEL_OK")
</pallas_src>

<mosaic_0001>
module attributes {stable_mosaic.version = 11 : i64} {
  func.func @ffn_kernel(%arg0: i32, %arg1: memref<8x32xf32, #tpu.memory_space<vmem>>, %arg2: memref<1x32xf32, #tpu.memory_space<vmem>>, %arg3: memref<1x32xf32, #tpu.memory_space<vmem>>, %arg4: memref<32x64xbf16, #tpu.memory_space<vmem>>, %arg5: memref<1x64xf32, #tpu.memory_space<vmem>>, %arg6: memref<64x32xbf16, #tpu.memory_space<vmem>>, %arg7: memref<1x32xf32, #tpu.memory_space<vmem>>, %arg8: memref<8x32xf32, #tpu.memory_space<vmem>>) attributes {dimension_semantics = [#tpu.dimension_semantics<parallel>], iteration_bounds = array<i64: 2>, scalar_prefetch = 0 : i64, scratch_operands = 0 : i64, tpu.core_type = #tpu.core_type<tc>, window_params = [{transform_indices = @transform_0, window_bounds = array<i64: 8, 32>}, {pipeline_mode = #tpu.pipeline_mode<synchronous>, transform_indices = @transform_1, window_bounds = array<i64: 1, 32>}, {pipeline_mode = #tpu.pipeline_mode<synchronous>, transform_indices = @transform_2, window_bounds = array<i64: 1, 32>}, {pipeline_mode = #tpu.pipeline_mode<synchronous>, transform_indices = @transform_3, window_bounds = array<i64: 32, 64>}, {pipeline_mode = #tpu.pipeline_mode<synchronous>, transform_indices = @transform_4, window_bounds = array<i64: 1, 64>}, {pipeline_mode = #tpu.pipeline_mode<synchronous>, transform_indices = @transform_5, window_bounds = array<i64: 64, 32>}, {pipeline_mode = #tpu.pipeline_mode<synchronous>, transform_indices = @transform_6, window_bounds = array<i64: 1, 32>}, {transform_indices = @transform_7, window_bounds = array<i64: 8, 32>}]} {
    %c0 = arith.constant 0 : index
    %c0_0 = arith.constant 0 : index
    %0 = vector.load %arg1[%c0, %c0_0] : memref<8x32xf32, #tpu.memory_space<vmem>>, vector<8x32xf32>
    %cst = arith.constant dense<0.000000e+00> : vector<8xf32>
    %1 = vector.multi_reduction <add>, %0, %cst [1] : vector<8x32xf32> to vector<8xf32>
    %2 = vector.shape_cast %1 : vector<8xf32> to vector<8x1xf32>
    %cst_1 = arith.constant 3.200000e+01 : f32
    %3 = vector.broadcast %cst_1 : f32 to vector<8x1xf32>
    %4 = arith.divf %2, %3 : vector<8x1xf32>
    %5 = vector.broadcast %4 : vector<8x1xf32> to vector<8x32xf32>
    %6 = arith.subf %0, %5 : vector<8x32xf32>
    %7 = arith.mulf %6, %6 : vector<8x32xf32>
    %cst_2 = arith.constant dense<0.000000e+00> : vector<8xf32>
    %8 = vector.multi_reduction <add>, %7, %cst_2 [1] : vector<8x32xf32> to vector<8xf32>
    %9 = vector.shape_cast %8 : vector<8xf32> to vector<8x1xf32>
    %cst_3 = arith.constant 3.200000e+01 : f32
    %10 = vector.broadcast %cst_3 : f32 to vector<8x1xf32>
    %11 = arith.divf %9, %10 : vector<8x1xf32>
    %cst_4 = arith.constant 9.99999997E-7 : f32
    %12 = vector.broadcast %cst_4 : f32 to vector<8x1xf32>
    %13 = arith.addf %11, %12 : vector<8x1xf32>
    %14 = math.rsqrt %13 : vector<8x1xf32>
    %15 = vector.broadcast %14 : vector<8x1xf32> to vector<8x32xf32>
    %16 = arith.mulf %6, %15 : vector<8x32xf32>
    %c0_5 = arith.constant 0 : index
    %c0_6 = arith.constant 0 : index
    %17 = vector.load %arg2[%c0_5, %c0_6] : memref<1x32xf32, #tpu.memory_space<vmem>>, vector<1x32xf32>
    %18 = vector.broadcast %17 : vector<1x32xf32> to vector<8x32xf32>
    %19 = arith.mulf %16, %18 : vector<8x32xf32>
    %c0_7 = arith.constant 0 : index
    %c0_8 = arith.constant 0 : index
    %20 = vector.load %arg3[%c0_7, %c0_8] : memref<1x32xf32, #tpu.memory_space<vmem>>, vector<1x32xf32>
    %21 = vector.broadcast %20 : vector<1x32xf32> to vector<8x32xf32>
    %22 = arith.addf %19, %21 : vector<8x32xf32>
    %23 = arith.truncf %22 : vector<8x32xf32> to vector<8x32xbf16>
    %c0_9 = arith.constant 0 : index
    %c0_10 = arith.constant 0 : index
    %24 = vector.load %arg4[%c0_9, %c0_10] : memref<32x64xbf16, #tpu.memory_space<vmem>>, vector<32x64xbf16>
    %cst_11 = arith.constant dense<0.000000e+00> : vector<8x64xf32>
    %25 = tpu.matmul %23, %24, %cst_11 {dimension_numbers = #tpu.dot_dimension_numbers<[1], [0], [0], [1], [0, 0, 1, 1], [], []>} : vector<8x32xbf16>, vector<32x64xbf16>, vector<8x64xf32> -> vector<8x64xf32>
    %c0_12 = arith.constant 0 : index
    %c0_13 = arith.constant 0 : index
    %26 = vector.load %arg5[%c0_12, %c0_13] : memref<1x64xf32, #tpu.memory_space<vmem>>, vector<1x64xf32>
    %27 = vector.broadcast %26 : vector<1x64xf32> to vector<8x64xf32>
    %28 = arith.addf %25, %27 : vector<8x64xf32>
    %cst_14 = arith.constant 0.000000e+00 : f32
    %29 = vector.broadcast %cst_14 : f32 to vector<8x64xf32>
    %30 = arith.maximumf %28, %29 : vector<8x64xf32>
    %31 = arith.truncf %30 : vector<8x64xf32> to vector<8x64xbf16>
    %c0_15 = arith.constant 0 : index
    %c0_16 = arith.constant 0 : index
    %32 = vector.load %arg6[%c0_15, %c0_16] : memref<64x32xbf16, #tpu.memory_space<vmem>>, vector<64x32xbf16>
    %cst_17 = arith.constant dense<0.000000e+00> : vector<8x32xf32>
    %33 = tpu.matmul %31, %32, %cst_17 {dimension_numbers = #tpu.dot_dimension_numbers<[1], [0], [0], [1], [0, 0, 1, 1], [], []>} : vector<8x64xbf16>, vector<64x32xbf16>, vector<8x32xf32> -> vector<8x32xf32>
    %c0_18 = arith.constant 0 : index
    %c0_19 = arith.constant 0 : index
    %34 = vector.load %arg7[%c0_18, %c0_19] : memref<1x32xf32, #tpu.memory_space<vmem>>, vector<1x32xf32>
    %35 = vector.broadcast %34 : vector<1x32xf32> to vector<8x32xf32>
    %36 = arith.addf %33, %35 : vector<8x32xf32>
    %c0_20 = arith.constant 0 : index
    %c0_21 = arith.constant 0 : index
    %37 = vector.load %arg8[%c0_20, %c0_21] : memref<8x32xf32, #tpu.memory_space<vmem>>, vector<8x32xf32>
    tpu.vector_store %arg8[%c0_20, %c0_21], %36 {strides = array<i32>} : memref<8x32xf32, #tpu.memory_space<vmem>>, vector<8x32xf32>,
    return
  }
  func.func @transform_0(%arg0: i32) -> (i32, i32) {
    %c0_i32 = arith.constant 0 : i32
    %c0_i32_0 = arith.constant 0 : i32
    return %arg0, %c0_i32 : i32, i32
  }
  func.func @transform_1(%arg0: i32) -> (i32, i32) {
    %c0_i32 = arith.constant 0 : i32
    %c0_i32_0 = arith.constant 0 : i32
    %c0_i32_1 = arith.constant 0 : i32
    return %c0_i32, %c0_i32_0 : i32, i32
  }
  func.func @transform_2(%arg0: i32) -> (i32, i32) {
    %c0_i32 = arith.constant 0 : i32
    %c0_i32_0 = arith.constant 0 : i32
    %c0_i32_1 = arith.constant 0 : i32
    return %c0_i32, %c0_i32_0 : i32, i32
  }
  func.func @transform_3(%arg0: i32) -> (i32, i32) {
    %c0_i32 = arith.constant 0 : i32
    %c0_i32_0 = arith.constant 0 : i32
    %c0_i32_1 = arith.constant 0 : i32
    return %c0_i32, %c0_i32_0 : i32, i32
  }
  func.func @transform_4(%arg0: i32) -> (i32, i32) {
    %c0_i32 = arith.constant 0 : i32
    %c0_i32_0 = arith.constant 0 : i32
    %c0_i32_1 = arith.constant 0 : i32
    return %c0_i32, %c0_i32_0 : i32, i32
  }
  func.func @transform_5(%arg0: i32) -> (i32, i32) {
    %c0_i32 = arith.constant 0 : i32
    %c0_i32_0 = arith.constant 0 : i32
    %c0_i32_1 = arith.constant 0 : i32
    return %c0_i32, %c0_i32_0 : i32, i32
  }
  func.func @transform_6(%arg0: i32) -> (i32, i32) {
    %c0_i32 = arith.constant 0 : i32
    %c0_i32_0 = arith.constant 0 : i32
    %c0_i32_1 = arith.constant 0 : i32
    return %c0_i32, %c0_i32_0 : i32, i32
  }
  func.func @transform_7(%arg0: i32) -> (i32, i32) {
    %c0_i32 = arith.constant 0 : i32
    %c0_i32_0 = arith.constant 0 : i32
    return %arg0, %c0_i32 : i32, i32
  }
}

</mosaic_0001>

<bundles_post_ra>
// kernel: tpu_custom_call.1
= control target key start
LH: loop header
LB: loop body
LE: loop exit
PB: predicated region body
PF: predicated region fallthrough
CT: control target
= control target key end

     0   :  { %12 = vsyncpa [#allocation3], 0  ;;  %s798_s0 = inlined_call_operand.vmem [shape: f32[16,32], index: 0, kind: input, shape index: {}]   ;;  %s799_s1 = inlined_call_operand.vmem [shape: f32[1,32], index: 1, kind: input, shape index: {}]   ;;  %s800_s2 = inlined_call_operand.vmem [shape: f32[1,32], index: 2, kind: input, shape index: {}]   ;;  %s801_s3 = inlined_call_operand.vmem [shape: bf16[32,64], index: 3, kind: input, shape index: {}]   ;;  %s802_s4 = inlined_call_operand.vmem [shape: f32[1,64], index: 4, kind: input, shape index: {}]   ;;  %s803_s5 = inlined_call_operand.vmem [shape: bf16[64,32], index: 5, kind: input, shape index: {}]   ;;  %s804_s6 = inlined_call_operand.vmem [shape: f32[1,32], index: 6, kind: input, shape index: {}]   ;;  %s805_s7 = inlined_call_operand.hbm [shape: f32[16,32], index: 7, kind: output, shape index: {}]  }
   0x1   :  { %14 = vsyncpa [#allocation3 + $0x1], 0  ;;  %s679_s24 = smov 0   ;;  %s681_s25 = smov 0  }
   0x2   :  { %s683_s26 = smov 0   ;;  %s685_s27 = smov 0  }
   0x3 LB: > { %s700_s28 = sadd.s32 4294967295, %s636_s27   ;;  %s484_s29 = sadd.s32 4294967294, %s636_s27   ;;  %s636_s27 = sphi %s685_s27, %s811_s27   ;;  %s632_s26 = sphi %s683_s26, %s810_s26   ;;  %s628_s25 = sphi %s681_s25, %s809_s25   ;;  %s624_s24 = sphi %s679_s24, %s808_s24  }
   0x4   : > { %s704_s30 = sadd.s32 1, %s636_s27   ;;  %s179_s8 = sadd.s32 1, %s632_s26 }
   0x5   : > { %s176_s9 = ssub.s32 %s636_s27, %s704_s30  ;;  %p189_p0 = scmp.ne.s32.totalorder %s632_s26, %s628_s25 }
   0x6   : > { %p177_p1 = scmp.eq.s32.totalorder %s176_s9, 0  ;;  %p190_p2 = scmp.eq.s32.totalorder %s700_s28, 1 }
   0x7   : > { %p195_p3 = scmp.ne.s32.totalorder %s628_s25, %s624_s24  ;;  %p196_p4 = scmp.eq.s32.totalorder %s484_s29, 1 }
   0x8   : > { %s715_s10 = scalar_select %p177_p1, %s632_s26, %s179_s8  }
   0x9   : > { %p717_p5 = por %p190_p2, %p189_p0  ;;  %p721_p6 = por %p196_p4, %p195_p3 }
   0xa   : > { %p487_p7 = scmp.ge.s32.totalorder %s636_s27, 1  ;;  %p239_p8 = scmp.lt.s32.totalorder %s636_s27, 3 }
   0xc   : > { %p240_p9 = pnand %p487_p7, %p239_p8 }
   0xd   : > { %p270_p10 = scmp.lt.s32.totalorder (!%p240_p9), %s700_s28, 1  ;;  %s267_s22 = sand.u32 (!%p240_p9), 1, %s628_s25  }
   0xe   : > { %243 = sbr.rel (%p240_p9) target bundleno = 560 (0x230), region = 48  ;;  %s517_s23 = sshll.u32 (!%p240_p9), %s700_s28, 3 }
   0xf   : > { %s488_s29 = sshll.u32 (!%p240_p9), %s267_s22, 3 }
  0x10   : > { %s269_s16 = scalar_lea.vmem (!%p240_p9), [#allocation2], %s488_s29  ;;  %s594_s29 = scalar_lea.hbm (!%p240_p9), %s805_s7, 16 }
  0x13   : > { %s271_s13 = scalar_select %p270_p10, %s700_s28, 1  ;;  %vm276_vm0 = vcmask 261120   ;;  %v638_v2 = vmov 32.0   ;;  %v521_v14 = vld [vmem:[%s801_s3 + $0x8] sm:$0xff]  ;;  %v520_v15 = vld [vmem:[%s801_s3] sm:$0xff]  ;;  %v525_v16 = vld [vmem:[%s803_s5 + $0x18] sm:$0xff] }
  0x14   : > { %570 = vrcp.f32 %v638_v2  ;;  %346 = vmatpush.bf16.msra.mxu0 %v521_v14  ;;  %399 = vmatpush.bf16.msra.mxu1 %v525_v16  ;;  %v524_v19 = vld [vmem:[%s803_s5 + $0x10] sm:$0xff]  ;;  %v566_v27 = vld [vmem:[%s799_s1] ss:$0 sm:$0xff]  ;;  %v523_v34 = vld [vmem:[%s803_s5 + $0x8] sm:$0xff]  ;;  %vm391_vm5 = vcmask 523264   ;;  %s410_s28 = scalar_lea.sflag [#allocation3], %s267_s22 }
  0x15   : > { %s489_s14 = sshll.u32 %s271_s13, 3  ;;  %v567_v30 = vld [vmem:[%s800_s2] ss:$0 sm:$0xff]  ;;  %s420_s13 = scalar_lea.hbm %s805_s7, %s517_s23 }
  0x16   : > { %s273_s17 = scalar_lea.vmem %s798_s0, %s489_s14  ;;  %v522_v35 = vld [vmem:[%s803_s5] sm:$0xff]  ;;  %s424_s18 = sshll.u32 %s420_s13, 4  ;;  %s425_s18 = int_to_ptr.hbm [resolvable:$true] %s424_s18 }
  0x17   : > { %v275_v0 = vld [vmem:[%s273_s17] sm:$0xff]  ;;  %s422_s17 = sshll.u32 %s269_s16, 4  ;;  %s588_s19 = sshra.s32 %s425_s18, 4  ;;  %s423_s17 = int_to_ptr.vmem [resolvable:$true] %s422_s17  ;;  %s589_s19 = int_to_ptr.hbm [resolvable:$true] %s588_s19 }
  0x18   : > { %v277_v1 = vsel %vm276_vm0, %v275_v0, 0.0  ;;  %347 = vmatpush.bf16.msra.mxu0 %v520_v15  ;;  %400 = vmatpush.bf16.msra.mxu1 %v524_v19  ;;  %v568_v36 = vld [vmem:[%s802_s4] ss:$0 sm:$0xff]  ;;  %s590_s20 = scalar_lea.hbm %s589_s19, 8  ;;  %p595_p0 = scmp.lt.s32.totalorder %s589_s19, %s805_s7 }
  0x19   : > { %278 = vadd.xlane.f32.xlu0 %v277_v1  ;;  %v569_v42 = vld [vmem:[%s804_s6] ss:$0 sm:$0xff]  ;;  %p591_p11 = scmp.ne.s32.totalorder %s589_s19, %s590_s20  ;;  %p596_p1 = scmp.lt.s32.totalorder %s594_s29, %s590_s20 }
  0x1a   : > { %v571_v3 = vpop.eup %570 }
  0x1b   : > { %v281_v4 = vmul.f32 32.0, %v571_v3  ;;  %vm285_vm1 = vweird.f32 %v571_v3  ;;  %p592_p12 = pnand %p591_p11, %p717_p5  ;;  %p597_p2 = por %p596_p1, %p595_p0 }
  0x1c   : > { %401 = vmatpush.bf16.msra.mxu1 %v523_v34 }
  0x1d   : > { %v282_v5 = vsub.f32 1.0, %v281_v4  ;;  %p593_p13 = pneg %p592_p12 }
  0x1f   : > { %v283_v6 = vmul.f32 %v571_v3, %v282_v5  ;;  %p598_p3 = pnand %p597_p2, %p593_p13 }
  0x20   : > { %402 = vmatpush.bf16.msra.mxu1 %v522_v35 }
  0x21   : > { %v284_v7 = vadd.f32 %v571_v3, %v283_v6 }
  0x23   : > { %v286_v8 = vsel %vm285_vm1, %v571_v3, %v284_v7 }
  0x8c   : > { %v279_v9 = vpop.xlane.xlu0 %278 }
  0x8d   : > { %v287_v10 = vmul.f32 %v286_v8, %v279_v9 }
  0x8f   : > { %v288_v11 = vsub.f32 %v275_v0, %v287_v10 }
  0x91   : > { %v289_v12 = vmul.f32 %v288_v11, %v288_v11 }
  0x93   : > { %v290_v13 = vsel %vm276_vm0, %v289_v12, 0.0 }
  0x94   : > { %291 = vadd.xlane.f32.xlu0 %v290_v13 }
 0x107   : > { %v292_v17 = vpop.xlane.xlu0 %291 }
 0x108   : > { %v293_v18 = vmul.f32 %v292_v17, %v286_v8 }
 0x10a   : > { %v294_v20 = vadd.f32 1e-06, %v293_v18 }
 0x10c   : > { %572 = vrsqrt.f32 %v294_v20  ;;  %vm301_vm3 = vweird.f32 %v294_v20 }
 0x112   : > { %v573_v21 = vpop.eup %572 }
 0x113   : > { %v296_v22 = vmul.f32 %v573_v21, %v294_v20  ;;  %vm302_vm2 = vweird.f32 %v573_v21 }
 0x114   : > { %vm303_vm4 = vmor %vm301_vm3, %vm302_vm2 }
 0x115   : > { %v297_v23 = vmul.f32 %v573_v21, %v296_v22 }
 0x117   : > { %v298_v24 = vmul.f32 0.5, %v297_v23 }
 0x119   : > { %v299_v25 = vsub.f32 1.5, %v298_v24 }
 0x11b   : > { %v300_v26 = vmul.f32 %v573_v21, %v299_v25 }
 0x11d   : > { %v304_v28 = vsel %vm303_vm4, %v573_v21, %v300_v26 }
 0x11e   : > { %v305_v29 = vmul.f32 %v304_v28, %v288_v11 }
 0x120   : > { %v310_v31 = vmul.f32 %v566_v27, %v305_v29 }
 0x122   : > { %v315_v32 = vadd.f32 %v567_v30, %v310_v31 }
 0x124   : > { %v316_v33 = vpack.c.bf16 %v315_v32, %v315_v32 }
 0x126   : > { %498 = vmatmul.msk.bf16.vlgmr.msra.gmra.mxu0 %vm276_vm0, %v316_v33 }
 0x1a3   : > { %v349_v37 = vpop.f32.mrf.mxu0 }
 0x1a4   : > { %v350_v38 = vadd.f32 %v568_v36, %v349_v37 }
 0x1a6   : > { %v353_v39 = vmax.f32 %v350_v38, 0.0 }
 0x1a8   : > { %v354_v40 = vpack.c.bf16 %v353_v39, %v353_v39 }
 0x1aa   : > { %515 = vmatmul.msk.bf16.vlgmr.msra.gmra.mxu1 %vm391_vm5, %v354_v40 }
 0x1ab   : > { %v351_v41 = vpop.f32.mrf.mxu0 }
 0x227   : > { %v404_v43 = vpop.f32.mrf.mxu1 }
 0x228   : > { %v405_v44 = vadd.f32 %v569_v42, %v404_v43 }
 0x22a   : > { %408 = vst.msk [vmem:[%s269_s16] sm:$0xff] %vm276_vm0, %v405_v44 }
 0x22b   : > { %601 = shalt.err (!%p598_p3)
}
 0x22c   : > { %526 = dma.vmem_to_hbm [thread:$0]  (%p717_p5), %s423_s17, 128, %s425_s18, %s410_s28  }
 0x22f   : > { %v406_v45 = vpop.f32.mrf.mxu1 }
 0x230 PF: > { %p532_p4 = scmp.ge.s32.totalorder %s636_s27, 2  ;;  %s436_s22 = sand.u32 1, %s624_s24  }
 0x231   : > { %s437_s13 = scalar_lea.sflag [#allocation3], %s436_s22 }
 0x232   : > { %p529_p7 = pnand %p532_p4, %p721_p6 }
 0x234   : > { %p530_p8 = pneg %p529_p7 }
 0x236   : > { %619 = dma.done.wait (%p530_p8), %s437_s13, 128  }
 0x237   : > { %621 = vsyncadd (%p530_p8), %s437_s13, 4294967168  ;;  %p17_p9 = scmp.ge.s32.totalorder %s704_s30, 4   ;;  %s808_s24 = smov %s628_s25 }
 0x238   : > { %s809_s25 = smov %s632_s26  ;;  %s810_s26 = smov %s715_s10 }
 0x239   : > { %s811_s27 = smov %s704_s30  ;;  %19 = sbr.rel (!%p17_p9) target bundleno = 3 (0x3), region = 83 }
 0x23e   :  { %443 = vsyncpa [#allocation3], 1 }
 0x23f   :  { %445 = vsyncpa [#allocation3 + $0x1], 1 }

</bundles_post_ra>
